<compile_context>
chip_gen: v7x
topology: tpu7x:2x2x1
jax: 0.10.0
libtpu: 0.0.40
codegen_flags: <defaults>
</compile_context>

<pallas_src>
import math

import jax
import jax.numpy as jnp
from jax.experimental import pallas as pl
from jax.experimental.pallas import tpu as pltpu


def _round_up(x, m):
    return ((x + m - 1) // m) * m


def _linear_relu6_kernel(x_ref, w_ref, o_ref):
    # x_ref: (K, TM)  lane-dense tile of the transposed (and padded) input
    # w_ref: (N, K)   tiny resident weight (PyTorch layout)
    # o_ref: (N, TM)  lane-dense output tile
    x = x_ref[...]
    w = w_ref[...]
    K = x.shape[0]

    # K unrolled VPU MACs (no MXU): y[n, m] = sum_k w[n, k] * x[k, m]
    y = w[:, 0:1] * x[0:1, :]
    for k in range(1, K):
        y = y + w[:, k:k + 1] * x[k:k + 1, :]

    # + 3 and relu6, fused in-kernel.
    o_ref[...] = jnp.clip(y + 3.0, 0.0, 6.0).astype(o_ref.dtype)


def linear_relu6(x, weight, *, tm=1024):
    """relu6(x @ weight.T + 3).  x: (..., K) f32, weight: (N, K) f32 (torch layout)."""
    *lead, K = x.shape
    N, Kw = weight.shape
    assert Kw == K

    M = 1
    for d in lead:
        M *= int(d)

    # Lane-dense layout: features on sublanes, flattened batch on lanes.
    xt = x.reshape(M, K).T                         # (K, M)

    # Tile size: multiple of 128, no larger than the (rounded-up) batch.
    tm = _round_up(min(tm, _round_up(M, 128)), 128)
    M_pad = _round_up(M, tm)
    if M_pad != M:
        xt = jnp.pad(xt, ((0, 0), (0, M_pad - M)))  # padded tail sliced off below

    grid = (M_pad // tm,)

    out_t = pl.pallas_call(
        _linear_relu6_kernel,
        out_shape=jax.ShapeDtypeStruct((N, M_pad), x.dtype),
        grid=grid,
        in_specs=[
            # Batch-tiled input: (K, tm); K equals the full array dim, tm % 128 == 0.
            pl.BlockSpec((K, tm), lambda i: (0, i)),
            # Tiny weight, resident every step (constant index_map -> single DMA).
            pl.BlockSpec((N, K), lambda i: (0, 0)),
        ],
        # Lane-dense output: last dim is the 128-multiple batch tile.
        out_specs=pl.BlockSpec((N, tm), lambda i: (0, i)),
        compiler_params=pltpu.CompilerParams(
            dimension_semantics=("parallel",)),
    )(xt, weight)

    # Back to the PyTorch output layout (..., N).
    return out_t[:, :M].T.reshape(*lead, N)


if __name__ == "__main__":
    key = jax.random.PRNGKey(0)
    kx, kw, kx2 = jax.random.split(key, 3)

    # Deterministic stand-in for nn.Linear(3, 8, bias=False).weight
    # (uniform(-1/sqrt(3), 1/sqrt(3)), matching the kaiming-uniform bound).
    bound = 1.0 / math.sqrt(3.0)
    weight = jax.random.uniform(kw, (8, 3), dtype=jnp.float32,
                                minval=-bound, maxval=bound)

    def ref_fn(xv, wv):
        return jnp.clip(jnp.einsum("...k,nk->...n", xv, wv) + 3.0, 0.0, 6.0)

    # Small input consistent with the module's linear (last dim = in_features = 3).
    x = jax.random.normal(kx, (2, 4, 16, 3), dtype=jnp.float32)
    out = linear_relu6(x, weight)
    jax.block_until_ready(out)
    assert out.shape == (2, 4, 16, 8)
    assert jnp.allclose(out, ref_fn(x, weight), atol=1e-5, rtol=1e-5)

    # Ragged batch (M = 105, not a multiple of 128) exercises the padded-tail path.
    x_tail = jax.random.normal(kx2, (3, 5, 7, 3), dtype=jnp.float32)
    out_tail = linear_relu6(x_tail, weight)
    jax.block_until_ready(out_tail)
    assert out_tail.shape == (3, 5, 7, 8)
    assert jnp.allclose(out_tail, ref_fn(x_tail, weight), atol=1e-5, rtol=1e-5)

    print("KERNEL_OK")
</pallas_src>

<mosaic_0001>
module attributes {stable_mosaic.version = 11 : i64} {
  func.func @_linear_relu6_kernel(%arg0: i32, %arg1: memref<3x128xf32, #tpu.memory_space<vmem>>, %arg2: memref<8x3xf32, #tpu.memory_space<vmem>>, %arg3: memref<8x128xf32, #tpu.memory_space<vmem>>) attributes {dimension_semantics = [#tpu.dimension_semantics<parallel>], iteration_bounds = array<i64: 1>, scalar_prefetch = 0 : i64, scratch_operands = 0 : i64, tpu.core_type = #tpu.core_type<tc>, window_params = [{transform_indices = @transform_0, window_bounds = array<i64: 3, 128>}, {pipeline_mode = #tpu.pipeline_mode<synchronous>, transform_indices = @transform_1, window_bounds = array<i64: 8, 3>}, {transform_indices = @transform_2, window_bounds = array<i64: 8, 128>}]} {
    %c0 = arith.constant 0 : index
    %c0_0 = arith.constant 0 : index
    %0 = vector.load %arg1[%c0, %c0_0] : memref<3x128xf32, #tpu.memory_space<vmem>>, vector<3x128xf32>
    %c0_1 = arith.constant 0 : index
    %c0_2 = arith.constant 0 : index
    %1 = vector.load %arg2[%c0_1, %c0_2] : memref<8x3xf32, #tpu.memory_space<vmem>>, vector<8x3xf32>
    %2 = vector.extract_strided_slice %1 {offsets = [0, 0], sizes = [8, 1], strides = [1, 1]} : vector<8x3xf32> to vector<8x1xf32>
    %3 = vector.extract_strided_slice %0 {offsets = [0, 0], sizes = [1, 128], strides = [1, 1]} : vector<3x128xf32> to vector<1x128xf32>
    %4 = vector.broadcast %2 : vector<8x1xf32> to vector<8x128xf32>
    %5 = vector.broadcast %3 : vector<1x128xf32> to vector<8x128xf32>
    %6 = arith.mulf %4, %5 : vector<8x128xf32>
    %7 = vector.extract_strided_slice %1 {offsets = [0, 1], sizes = [8, 1], strides = [1, 1]} : vector<8x3xf32> to vector<8x1xf32>
    %8 = vector.extract_strided_slice %0 {offsets = [1, 0], sizes = [1, 128], strides = [1, 1]} : vector<3x128xf32> to vector<1x128xf32>
    %9 = vector.broadcast %7 : vector<8x1xf32> to vector<8x128xf32>
    %10 = vector.broadcast %8 : vector<1x128xf32> to vector<8x128xf32>
    %11 = arith.mulf %9, %10 : vector<8x128xf32>
    %12 = arith.addf %6, %11 : vector<8x128xf32>
    %13 = vector.extract_strided_slice %1 {offsets = [0, 2], sizes = [8, 1], strides = [1, 1]} : vector<8x3xf32> to vector<8x1xf32>
    %14 = vector.extract_strided_slice %0 {offsets = [2, 0], sizes = [1, 128], strides = [1, 1]} : vector<3x128xf32> to vector<1x128xf32>
    %15 = vector.broadcast %13 : vector<8x1xf32> to vector<8x128xf32>
    %16 = vector.broadcast %14 : vector<1x128xf32> to vector<8x128xf32>
    %17 = arith.mulf %15, %16 : vector<8x128xf32>
    %18 = arith.addf %12, %17 : vector<8x128xf32>
    %cst = arith.constant 3.000000e+00 : f32
    %19 = vector.broadcast %cst : f32 to vector<8x128xf32>
    %20 = arith.addf %18, %19 : vector<8x128xf32>
    %cst_3 = arith.constant 0.000000e+00 : f32
    %cst_4 = arith.constant 6.000000e+00 : f32
    %21 = vector.broadcast %cst_3 : f32 to vector<8x128xf32>
    %22 = arith.maximumf %21, %20 : vector<8x128xf32>
    %23 = vector.broadcast %cst_4 : f32 to vector<8x128xf32>
    %24 = arith.minimumf %23, %22 : vector<8x128xf32>
    %c0_5 = arith.constant 0 : index
    %c0_6 = arith.constant 0 : index
    %25 = vector.load %arg3[%c0_5, %c0_6] : memref<8x128xf32, #tpu.memory_space<vmem>>, vector<8x128xf32>
    tpu.vector_store %arg3[%c0_5, %c0_6], %24 {strides = array<i32>} : memref<8x128xf32, #tpu.memory_space<vmem>>, vector<8x128xf32>,
    return
  }
  func.func @transform_0(%arg0: i32) -> (i32, i32) {
    %c0_i32 = arith.constant 0 : i32
    %c0_i32_0 = arith.constant 0 : i32
    return %c0_i32, %arg0 : i32, i32
  }
  func.func @transform_1(%arg0: i32) -> (i32, i32) {
    %c0_i32 = arith.constant 0 : i32
    %c0_i32_0 = arith.constant 0 : i32
    %c0_i32_1 = arith.constant 0 : i32
    return %c0_i32, %c0_i32_0 : i32, i32
  }
  func.func @transform_2(%arg0: i32) -> (i32, i32) {
    %c0_i32 = arith.constant 0 : i32
    %c0_i32_0 = arith.constant 0 : i32
    return %c0_i32, %arg0 : i32, i32
  }
}

</mosaic_0001>

<bundles_post_ra>
// kernel: tpu_custom_call.1
= control target key start
LH: loop header
LB: loop body
LE: loop exit
PB: predicated region body
PF: predicated region fallthrough
CT: control target
= control target key end

     0   :  { %v94_v1 = vmov 0   ;;  %v95_v2 = vmov 2   ;;  %s131_s0 = inlined_call_operand.vmem [shape: f32[3,128], index: 0, kind: input, shape index: {}]   ;;  %s132_s1 = inlined_call_operand.vmem [shape: f32[8,3], index: 1, kind: input, shape index: {}]   ;;  %s133_s2 = inlined_call_operand.hbm [shape: f32[8,128], index: 2, kind: output, shape index: {}]  }
   0x1   :  { %v13_v0 = vld [vmem:[%s132_s1] sm:$0xff]  ;;  %66 = vset.pattern.permute.xlu0 %v94_v1  ;;  %68 = vset.pattern.permute.xlu1 %v95_v2 }
   0x2   :  { %7 = vsyncpa [#allocation3], 0  ;;  %16 = vperm.xlu0 %66, %v13_v0   ;;  %35 = vperm.xlu1 %68, %v13_v0   ;;  %v96_v3 = vmov 1   ;;  %v19_v4 = vlaneseq  ;;  %v12_v9 = vld [vmem:[%s131_s0] sm:$0x7]  ;;  %s97_s1 = smov [#allocation2]  }
   0x3   :  { %s54_s13 = sshll.u32 %s97_s1, 4  ;;  %s55_s13 = int_to_ptr.vmem [resolvable:$true] %s54_s13 }
   0x4   :  { %v20_v5 = vshrl.u32 %v19_v4, 7  ;;  %s70_s14 = scalar_lea.vmem %s55_s13, 128  ;;  %p75_p1 = scmp.lt.s32.totalorder %s55_s13, %s55_s13 }
   0x5   :  { %p71_p0 = scmp.ne.s32.totalorder %s55_s13, %s70_s14  ;;  %p76_p2 = scmp.lt.s32.totalorder %s70_s14, %s70_s14 }
   0x6   :  { %67 = vset.pattern.permute.xlu0 %v96_v3  ;;  %v21_v6 = vsub.s32 0, %v20_v5  ;;  %v30_v7 = vsub.s32 1, %v20_v5  ;;  %v40_v8 = vsub.s32 2, %v20_v5 }
   0x7   :  { %25 = vperm.xlu0 %67, %v13_v0   ;;  %p77_p3 = por %p76_p2, %p75_p1 }
   0x8   :  { %v22_v11 = vrot.slane %v12_v9, %v21_v6  ;;  %v31_v12 = vrot.slane %v12_v9, %v30_v7  ;;  %v41_v13 = vrot.slane %v12_v9, %v40_v8 }
   0x9   :  { %p78_p4 = pnand %p77_p3, %p71_p0 }
   0xb   :  { %69 = vset.pattern.permute.xlu0 %v95_v2 }
  0x81   :  { %v17_v10 = vpop.permute.xlu0 %16  ;;  %v36_v14 = vpop.permute.xlu1 %35 }
  0x82   :  { %v23_v16 = vmul.f32 %v22_v11, %v17_v10  ;;  %v42_v18 = vmul.f32 %v41_v13, %v36_v14 }
  0x86   :  { %v26_v15 = vpop.permute.xlu0 %25 }
  0x87   :  { %v32_v17 = vmul.f32 %v31_v12, %v26_v15 }
  0x89   :  { %v33_v19 = vadd.f32 %v32_v17, %v23_v16 }
  0x8b   :  { %v43_v20 = vadd.f32 %v42_v18, %v33_v19 }
  0x8d   :  { %v44_v21 = vadd.f32 3.0, %v43_v20 }
  0x8f   :  { %v45_v22 = vmax.f32 %v44_v21, 0.0 }
  0x91   :  { %v46_v23 = vmin.f32 %v45_v22, 6.0 }
  0x93   :  { %47 = vst [vmem:[#allocation2] sm:$0xff] %v46_v23 }
  0x94   :  { %81 = shalt.err (!%p78_p4)
}
  0x95   :  { %s82_s16 = scalar_lea.hbm %s133_s2, 128 }
  0x96   :  { %p83_p5 = scmp.ne.s32.totalorder %s133_s2, %s82_s16  ;;  %p86_p6 = scmp.lt.u32.totalorder %s82_s16, %s133_s2 }
  0x98   :  { %p88_p7 = pnand %p86_p6, %p83_p5 }
  0x9a   :  { %91 = shalt.err (!%p88_p7)
}
  0x9b   :  { %57 = dma.vmem_to_hbm [thread:$0]  %s55_s13, 128, %s133_s2, [#allocation3]  }
  0x9c   :  { %92 = dma.done.wait [#allocation3], 128  }
  0x9d   :  { %93 = vsyncadd [#allocation3], 4294967168 }
  0x9e   :  { %61 = vsyncpa [#allocation3], 1 }

</bundles_post_ra>
